<compile_context>
chip_gen: v7x
topology: tpu7x:2x2x1
jax: 0.10.0
libtpu: 0.0.40
codegen_flags: <defaults>
</compile_context>

<pallas_src>
import jax
import jax.numpy as jnp
from jax.experimental import pallas as pl
from jax.experimental.pallas import tpu as pltpu


# ---------------------------------------------------------------------------
# Kernels
# ---------------------------------------------------------------------------

def _snnfc_kernel_single(x_ref, w_ref, o_ref):
    """No K split: one (tm, K) x panel  x  (K, tn) weight tile -> (tm, tn)."""
    o_ref[...] = jnp.dot(
        x_ref[...].astype(w_ref.dtype), w_ref[...],
        preferred_element_type=jnp.float32,
    ).astype(o_ref.dtype)


def _snnfc_kernel_ksplit_f32out(x_ref, w_ref, o_ref):
    """K split, f32 output: accumulate straight into the resident output block."""
    @pl.when(pl.program_id(2) == 0)
    def _():
        o_ref[...] = jnp.zeros_like(o_ref)

    o_ref[...] += jnp.dot(
        x_ref[...].astype(w_ref.dtype), w_ref[...],
        preferred_element_type=jnp.float32,
    )


def _snnfc_kernel_ksplit_acc(x_ref, w_ref, o_ref, acc_ref):
    """K split, non-f32 output: accumulate in an f32 VMEM scratch, cast at end."""
    k = pl.program_id(2)

    @pl.when(k == 0)
    def _():
        acc_ref[...] = jnp.zeros_like(acc_ref)

    acc_ref[...] += jnp.dot(
        x_ref[...].astype(w_ref.dtype), w_ref[...],
        preferred_element_type=jnp.float32,
    )

    @pl.when(k == pl.num_programs(2) - 1)
    def _():
        o_ref[...] = acc_ref[...].astype(o_ref.dtype)


# ---------------------------------------------------------------------------
# Wrapper
# ---------------------------------------------------------------------------

def _round_up(x, m):
    return (x + m - 1) // m * m


def prepare_snnfc_weight(weight, compute_dtype=jnp.bfloat16):
    """One-time weight prep, done OUTSIDE the hot path.

    Takes the native nn.Linear weight (d_out, d_in), transposes it to
    (d_in, d_out) and casts to the MXU streaming dtype.  bf16 halves the
    weight HBM traffic; pass jnp.float32 for an exact path.
    """
    return jnp.asarray(weight).T.astype(compute_dtype)


def snnfc_forward(x, weight_t, *, tm=512, tn=512, tk=512,
                  x_panel_budget=4 << 20, vmem_cap=40 << 20):
    """SNNFC.forward for the default config (no bias, no BN, dropout=0).

    Args:
      x: (B, d_in) activations (any float dtype; cast to the weight dtype
         inside the kernel, accumulation is always f32).
      weight_t: (d_in, d_out) prepared weight from prepare_snnfc_weight.
      tm, tn, tk: tile targets for large shapes (multiples of 8 / 128 / 128).
      x_panel_budget: max bytes for one (tm, K) x panel before K is split.
      vmem_cap: VMEM budget used for the weight-resident decision.
    Returns:
      (B, d_out) array in x.dtype, equal to x @ W^T of the original module.
    """
    B, d_in = x.shape
    k_w, d_out = weight_t.shape
    assert d_in == k_w, "weight_t must be the (d_in, d_out) prepared weight"

    out_dtype = x.dtype
    x_isz = jnp.dtype(x.dtype).itemsize
    w_isz = jnp.dtype(weight_t.dtype).itemsize
    o_isz = jnp.dtype(out_dtype).itemsize

    M, K, N = B, d_in, d_out

    # Tile shapes: full-dim blocks are always layout-legal; otherwise the
    # defaults are (8, 128)-aligned.  Boundary blocks are partial (pl.cdiv
    # grid, masked output stores) so no M/N padding of the arrays is needed.
    tm_ = M if M <= tm else tm
    tn_ = N if N <= tn else tn

    # Megacore: if both M and N fit a single tile, halve the M tile so the two
    # TensorCores of a v7x chip both get a block ("parallel" axes shard).
    if M <= tm_ and N <= tn_ and M >= 16:
        tm_ = _round_up(-(-M // 2), 8)

    # Decide whether to split K.  Keeping tk = K (no K grid axis) lets the
    # (tm_, K) x row-panel stay resident across the whole N axis (its block
    # index is constant over j) and removes the accumulator entirely.
    split_k = tm_ * K * x_isz > x_panel_budget

    if not split_k:
        if N > tn_:
            # Weight-resident variant (v6e lever): keep the whole (K, N)
            # weight in VMEM (constant block index -> one weight DMA per call)
            # when it fits the budget, so only x streams from HBM.
            wr_need = 2 * K * N * w_isz + 2 * tm_ * K * x_isz + 2 * tm_ * N * o_isz
            if wr_need <= vmem_cap:
                tn_ = N

        grid = (pl.cdiv(M, tm_), pl.cdiv(N, tn_))
        kernel = _snnfc_kernel_single
        in_specs = [
            pl.BlockSpec((tm_, K), lambda i, j: (i, 0)),    # x row-panel
            pl.BlockSpec((K, tn_), lambda i, j: (0, j)),    # weight (pre-transposed)
        ]
        out_specs = pl.BlockSpec((tm_, tn_), lambda i, j: (i, j))
        scratch_shapes = []
        dim_sem = ("parallel", "parallel")
        x_call, w_call = x, weight_t
        need = (2 * tm_ * K * x_isz + 2 * K * tn_ * w_isz + 2 * tm_ * tn_ * o_isz)
    else:
        # Pick a K tile that divides K when possible (avoids any padding).
        tk_ = next((c for c in (tk, 512, 256, 128) if c <= K and K % c == 0), tk)
        k_pad = _round_up(K, tk_)
        if k_pad == K:
            x_call, w_call = x, weight_t
        else:
            # Zero-padding of the contraction dim is required for correctness.
            # TODO(synk): for non-128-multiple d_in, pre-pad the weight at init
            # to avoid this per-call weight copy.
            x_call = jnp.pad(x, ((0, 0), (0, k_pad - K)))
            w_call = jnp.pad(weight_t, ((0, k_pad - K), (0, 0)))

        grid = (pl.cdiv(M, tm_), pl.cdiv(N, tn_), k_pad // tk_)
        if jnp.dtype(out_dtype) == jnp.dtype(jnp.float32):
            kernel = _snnfc_kernel_ksplit_f32out
            scratch_shapes = []
            acc_bytes = 0
        else:
            kernel = _snnfc_kernel_ksplit_acc
            scratch_shapes = [pltpu.VMEM((tm_, tn_), jnp.float32)]
            acc_bytes = tm_ * tn_ * 4
        in_specs = [
            pl.BlockSpec((tm_, tk_), lambda i, j, k: (i, k)),
            pl.BlockSpec((tk_, tn_), lambda i, j, k: (k, j)),
        ]
        out_specs = pl.BlockSpec((tm_, tn_), lambda i, j, k: (i, j))
        dim_sem = ("parallel", "parallel", "arbitrary")
        need = (2 * tm_ * tk_ * x_isz + 2 * tk_ * tn_ * w_isz
                + 2 * tm_ * tn_ * o_isz + acc_bytes)

    # Budget VMEM explicitly (v7x has 64 MiB physical / 32 MiB scoped default).
    vmem_limit = int(min(max(need * 2, 16 << 20), 60 << 20))

    cost = pl.CostEstimate(
        flops=2 * M * N * K,
        transcendentals=0,
        bytes_accessed=M * K * x_isz + K * N * w_isz + M * N * o_isz,
    )

    return pl.pallas_call(
        kernel,
        out_shape=jax.ShapeDtypeStruct((M, N), out_dtype),
        grid=grid,
        in_specs=in_specs,
        out_specs=out_specs,
        scratch_shapes=scratch_shapes,
        compiler_params=pltpu.CompilerParams(
            dimension_semantics=dim_sem,
            vmem_limit_bytes=vmem_limit,
        ),
        cost_estimate=cost,
    )(x_call, w_call)


def init_snnfc_weight(key, d_in, d_out):
    """Deterministic re-implementation of SNNFC._initialize_weights:
    uniform(-1, 1) then each output row divided by its L2 norm."""
    w = jax.random.uniform(key, (d_out, d_in), dtype=jnp.float32,
                           minval=-1.0, maxval=1.0)
    row_norm = jnp.sqrt(jnp.sum(w * w, axis=1, keepdims=True))
    return w / row_norm


if __name__ == "__main__":
    key = jax.random.PRNGKey(0)
    k_x, k_w, k_x2, k_w2 = jax.random.split(key, 4)

    # TODO(synk): VariationalHidDropout2d with p>0 (training-mode mask) and the
    # optional BatchNorm1d branch are not exercised for the default SNNFC
    # config (dropout=0.0, BN=False) and are omitted.

    # --- Default SNNFC config: y = x @ W^T (no bias, no BN, dropout=0) -----
    B, d_in, d_out = 8, 32, 64
    x = jax.random.normal(k_x, (B, d_in), dtype=jnp.float32)
    weight = init_snnfc_weight(k_w, d_in, d_out)      # (d_out, d_in)
    y_ref = x @ weight.T

    # Exact f32 path (no K split; tiny shapes -> full-dim blocks).
    w_t_f32 = prepare_snnfc_weight(weight, jnp.float32)
    y_f32 = snnfc_forward(x, w_t_f32)
    jax.block_until_ready(y_f32)
    assert y_f32.shape == (B, d_out)
    assert jnp.allclose(y_f32, y_ref, atol=1e-5, rtol=1e-5)

    # Production path: bf16 weight stream (prepared once), f32 accumulation.
    w_t_bf16 = prepare_snnfc_weight(weight)
    y_bf16 = snnfc_forward(x, w_t_bf16)
    jax.block_until_ready(y_bf16)
    assert y_bf16.shape == (B, d_out)
    assert jnp.allclose(y_bf16, y_ref, atol=5e-2, rtol=5e-2)

    # --- Exercise the K-split paths (forced with a tiny panel budget) ------
    B2, d_in2, d_out2 = 16, 384, 128
    x2 = jax.random.normal(k_x2, (B2, d_in2), dtype=jnp.float32)
    weight2 = init_snnfc_weight(k_w2, d_in2, d_out2)
    y2_ref = x2 @ weight2.T

    # f32 output -> accumulate directly into the resident output block.
    y2 = snnfc_forward(x2, prepare_snnfc_weight(weight2, jnp.float32),
                       x_panel_budget=1)
    jax.block_until_ready(y2)
    assert y2.shape == (B2, d_out2)
    assert jnp.allclose(y2, y2_ref, atol=2e-2, rtol=2e-2)

    # bf16 output -> f32 VMEM scratch accumulator path.
    y2_bf = snnfc_forward(x2.astype(jnp.bfloat16),
                          prepare_snnfc_weight(weight2),
                          x_panel_budget=1)
    jax.block_until_ready(y2_bf)
    assert y2_bf.dtype == jnp.bfloat16
    assert jnp.allclose(y2_bf.astype(jnp.float32), y2_ref,
                        atol=1.5e-1, rtol=1.5e-1)

    print("KERNEL_OK")
</pallas_src>

<mosaic_0001>
module attributes {stable_mosaic.version = 11 : i64} {
  func.func @_snnfc_kernel_single(%arg0: i32, %arg1: i32, %arg2: memref<8x32xf32, #tpu.memory_space<vmem>>, %arg3: memref<32x64xf32, #tpu.memory_space<vmem>>, %arg4: memref<8x64xf32, #tpu.memory_space<vmem>>) attributes {dimension_semantics = [#tpu.dimension_semantics<parallel>, #tpu.dimension_semantics<parallel>], iteration_bounds = array<i64: 1, 1>, scalar_prefetch = 0 : i64, scratch_operands = 0 : i64, tpu.core_type = #tpu.core_type<tc>, window_params = [{transform_indices = @transform_0, window_bounds = array<i64: 8, 32>}, {transform_indices = @transform_1, window_bounds = array<i64: 32, 64>}, {transform_indices = @transform_2, window_bounds = array<i64: 8, 64>}]} {
    %c0 = arith.constant 0 : index
    %c0_0 = arith.constant 0 : index
    %0 = vector.load %arg2[%c0, %c0_0] : memref<8x32xf32, #tpu.memory_space<vmem>>, vector<8x32xf32>
    %c0_1 = arith.constant 0 : index
    %c0_2 = arith.constant 0 : index
    %1 = vector.load %arg3[%c0_1, %c0_2] : memref<32x64xf32, #tpu.memory_space<vmem>>, vector<32x64xf32>
    %cst = arith.constant dense<0.000000e+00> : vector<8x64xf32>
    %2 = tpu.matmul %0, %1, %cst {dimension_numbers = #tpu.dot_dimension_numbers<[1], [0], [0], [1], [0, 0, 1, 1], [], []>} : vector<8x32xf32>, vector<32x64xf32>, vector<8x64xf32> -> vector<8x64xf32>
    %c0_3 = arith.constant 0 : index
    %c0_4 = arith.constant 0 : index
    %3 = vector.load %arg4[%c0_3, %c0_4] : memref<8x64xf32, #tpu.memory_space<vmem>>, vector<8x64xf32>
    tpu.vector_store %arg4[%c0_3, %c0_4], %2 {strides = array<i32>} : memref<8x64xf32, #tpu.memory_space<vmem>>, vector<8x64xf32>,
    return
  }
  func.func @transform_0(%arg0: i32, %arg1: i32) -> (i32, i32) {
    %c0_i32 = arith.constant 0 : i32
    %c0_i32_0 = arith.constant 0 : i32
    return %arg0, %c0_i32 : i32, i32
  }
  func.func @transform_1(%arg0: i32, %arg1: i32) -> (i32, i32) {
    %c0_i32 = arith.constant 0 : i32
    %c0_i32_0 = arith.constant 0 : i32
    return %c0_i32, %arg1 : i32, i32
  }
  func.func @transform_2(%arg0: i32, %arg1: i32) -> (i32, i32) {
    %c0_i32 = arith.constant 0 : i32
    return %arg0, %arg1 : i32, i32
  }
}

</mosaic_0001>

<bundles_post_ra>
// kernel: tpu_custom_call.1
= control target key start
LH: loop header
LB: loop body
LE: loop exit
PB: predicated region body
PF: predicated region fallthrough
CT: control target
= control target key end

     0   :  { %7 = vsyncpa [#allocation3], 0  ;;  %s304_s0 = inlined_call_operand.hbm [shape: f32[8,32], index: 0, kind: input, shape index: {}]   ;;  %s305_s1 = inlined_call_operand.hbm [shape: f32[32,64], index: 1, kind: input, shape index: {}]   ;;  %s306_s2 = inlined_call_operand.hbm [shape: f32[8,64], index: 2, kind: output, shape index: {}]  }
   0x1   :  { %8 = vsyncpa [#allocation6], 0 }
   0x2   :  { %9 = vsyncpa [#allocation4], 0  ;;  %s238_s9 = smov [#allocation2]   ;;  %s239_s11 = smov [#allocation5]  }
   0x3   :  { %s16_s10 = sshll.u32 %s238_s9, 4  ;;  %s25_s12 = sshll.u32 %s239_s11, 4  ;;  %s17_s10 = int_to_ptr.vmem [resolvable:$true] %s16_s10  ;;  %s261_s12 = int_to_ptr.vmem [resolvable:$true] %s25_s12 }
   0x4   :  { %s166_s15 = scalar_lea.hbm %s304_s0, 128 }
   0x5   :  { %p167_p0 = scmp.ne.s32.totalorder %s304_s0, %s166_s15  ;;  %p170_p1 = scmp.lt.u32.totalorder %s166_s15, %s304_s0 }
   0x7   :  { %p172_p2 = pnand %p170_p1, %p167_p0 }
   0x9   :  { %175 = shalt.err (!%p172_p2)
}
   0xa   :  { %s176_s20 = scalar_lea.vmem %s17_s10, 128  ;;  %p181_p4 = scmp.lt.s32.totalorder %s17_s10, %s17_s10 }
   0xb   :  { %p177_p3 = scmp.ne.s32.totalorder %s17_s10, %s176_s20  ;;  %p182_p5 = scmp.lt.s32.totalorder %s176_s20, %s176_s20 }
   0xd   :  { %p183_p6 = por %p182_p5, %p181_p4 }
   0xf   :  { %p184_p7 = pnand %p183_p6, %p177_p3 }
  0x11   :  { %187 = shalt.err (!%p184_p7)
}
  0x12   :  { %19 = dma.hbm_to_vmem [thread:$0]  %s304_s0, 128, %s17_s10, [#allocation3]  }
  0x13   :  { %s188_s25 = scalar_lea.hbm %s305_s1, 512 }
  0x14   :  { %p189_p8 = scmp.ne.s32.totalorder %s305_s1, %s188_s25  ;;  %p192_p9 = scmp.lt.u32.totalorder %s188_s25, %s305_s1 }
  0x16   :  { %p194_p10 = pnand %p192_p9, %p189_p8 }
  0x18   :  { %197 = shalt.err (!%p194_p10)
}
  0x19   :  { %s198_s30 = scalar_lea.vmem %s261_s12, 512  ;;  %p203_p12 = scmp.lt.s32.totalorder %s261_s12, %s261_s12 }
  0x1a   :  { %p199_p11 = scmp.ne.s32.totalorder %s261_s12, %s198_s30  ;;  %p204_p13 = scmp.lt.s32.totalorder %s198_s30, %s198_s30 }
  0x1c   :  { %p205_p0 = por %p204_p13, %p203_p12 }
  0x1e   :  { %p206_p1 = pnand %p205_p0, %p199_p11 }
  0x20   :  { %209 = shalt.err (!%p206_p1)
}
  0x21   :  { %s240_s0 = smov 128   ;;  %s241_s3 = smov 8  }
  0x22   :  { %31 = dma.hbm_to_vmem [thread:$0]  %s305_s1, 512, %s261_s12, [#allocation6], %s240_s0, %s240_s0, %s241_s3  }
  0x23   :  { %232 = dma.done.wait [#allocation3], 128  }
  0x24   :  { %233 = vsyncadd [#allocation3], 4294967168 }
  0x25   :  { %234 = dma.done.wait [#allocation6], 512  }
  0x26   :  { %235 = vsyncadd [#allocation6], 4294966784  ;;  %v242_v0 = vmov 0.0|0.0   ;;  %vm243_vm0 = vmmov 0   ;;  %v244_v1 = vmov 0.0   ;;  %v39_v2 = vld [vmem:[#allocation5] sm:$0xff] }
  0x27   :  { %152 = vmatprep.subr.bf16.mxu0 %v242_v0  ;;  %149 = vmatprep.mubr.msk.f32.mxu0 %vm243_vm0, %v244_v1  ;;  %v40_v3 = vld [vmem:[#allocation5 + $0x8] sm:$0xff]  ;;  %v41_v4 = vld [vmem:[#allocation5 + $0x10] sm:$0xff]  ;;  %v42_v6 = vld [vmem:[#allocation5 + $0x18] sm:$0xff]  ;;  %vm43_vm1 = vcmask 261120   ;;  %s245_s1 = smov [#allocation7]   ;;  %vm117_vm2 = vcmask 523264  }
  0x28   :  { %v153_v5 = vpack.c.bf16 %v40_v3, %v39_v2  ;;  %v156_v7 = vpack.c.bf16 %v42_v6, %v41_v4  ;;  %v38_v8 = vld [vmem:[#allocation2] sm:$0xff]  ;;  %s125_s6 = sshll.u32 %s245_s1, 4  ;;  %s126_s6 = int_to_ptr.vmem [resolvable:$true] %s125_s6 }
  0x29   :  { %s210_s7 = scalar_lea.vmem %s126_s6, 128  ;;  %p215_p3 = scmp.lt.s32.totalorder %s126_s6, %s126_s6 }
  0x2a   :  { %154 = vmatpush3.bf16.msra.mxu0 %v153_v5  ;;  %p211_p2 = scmp.ne.s32.totalorder %s126_s6, %s210_s7  ;;  %p216_p4 = scmp.lt.s32.totalorder %s210_s7, %s210_s7 }
  0x2b   :  { %155 = vmatprep.subr.bf16.mxu0 %v242_v0 }
  0x2c   :  { %p217_p5 = por %p216_p4, %p215_p3 }
  0x2e   :  { %157 = vmatpush3.bf16.msra.mxu0 %v156_v7  ;;  %p218_p6 = pnand %p217_p5, %p211_p2 }
  0x31   :  { %150 = vmatmul.mubr.msk.f32.vlgmr.msra.gmra.mrb[0].mxu0 %vm43_vm1, %v38_v8 }
 0x104   :  { %v113_v9 = vpop.f32.mrb[0].mxu0 }
 0x105   :  { %v151_v10 = vpop.f32.mrb[1].mxu0  ;;  %118 = vst.msk [vmem:[#allocation7] sm:$0xff] %vm117_vm2, %v113_v9 }
 0x106   :  { %221 = shalt.err (!%p218_p6)
}
 0x107   :  { %s222_s10 = scalar_lea.hbm %s306_s2, 128 }
 0x108   :  { %p223_p7 = scmp.ne.s32.totalorder %s306_s2, %s222_s10  ;;  %p226_p8 = scmp.lt.u32.totalorder %s222_s10, %s306_s2 }
 0x10a   :  { %p228_p9 = pnand %p226_p8, %p223_p7 }
 0x10c   :  { %231 = shalt.err (!%p228_p9)
}
 0x10d   :  { %128 = dma.vmem_to_hbm [thread:$0]  %s126_s6, 128, %s306_s2, [#allocation4]  }
 0x10e   :  { %236 = dma.done.wait [#allocation4], 128  }
 0x10f   :  { %237 = vsyncadd [#allocation4], 4294967168 }
 0x110   :  { %132 = vsyncpa [#allocation3], 1 }
 0x111   :  { %133 = vsyncpa [#allocation6], 1 }
 0x112   :  { %134 = vsyncpa [#allocation4], 1 }

</bundles_post_ra>
